<compile_context>
chip_gen: v7x
topology: tpu7x:2x2x1
jax: 0.10.0
libtpu: 0.0.40
codegen_flags: <defaults>
</compile_context>

<pallas_src>
import functools

import jax
import jax.numpy as jnp
from jax.experimental import pallas as pl
from jax.experimental.pallas import tpu as pltpu


def _parity_kernel(x_ref, m_ref, out_ref, *, alphabet_size):
    """x_ref: (b_tile, msg_len) bf16/f32; m_ref: (msg_len, parity_pad) same dtype;
    out_ref: (b_tile, parity_pad) int32, lane-dense."""
    acc = jnp.dot(x_ref[...], m_ref[...], preferred_element_type=jnp.float32)
    if alphabet_size & (alphabet_size - 1) == 0:
        # Power-of-two alphabet: integer mod == single cheap AND on the VPU.
        out_ref[...] = jnp.bitwise_and(
            acc.astype(jnp.int32), jnp.int32(alphabet_size - 1)
        )
    else:
        # Generic path: float remainder is exact here because parity values are
        # small non-negative integers (< msg_len * alphabet_size << 2^24).
        out_ref[...] = jnp.remainder(
            acc, jnp.float32(alphabet_size)
        ).astype(jnp.int32)


def random_systematic_linear_encode(x, matrix, alphabet_size):
    """x: (B, msg_len) integer symbols, matrix: (msg_len, parity_len) float.

    Returns (B, msg_len + parity_len) int32: [x | (x @ matrix) mod alphabet]."""
    B, msg_len = x.shape
    parity_len = matrix.shape[1]

    # bf16 operands are exact for alphabet_size <= 256 (integers <= 256 exact
    # in bf16); fall back to f32 otherwise.
    compute_dtype = jnp.bfloat16 if alphabet_size <= 256 else jnp.float32
    comp_itemsize = jnp.dtype(compute_dtype).itemsize

    # Lane-dense output: pad parity columns (with zero matrix columns) up to a
    # multiple of 128. Padded columns produce parity 0 and are sliced off below.
    parity_pad = max(128, ((parity_len + 127) // 128) * 128)
    m_comp = jnp.zeros((msg_len, parity_pad), compute_dtype)
    m_comp = m_comp.at[:, :parity_len].set(matrix.astype(compute_dtype))

    # Batch tile: keep a single (x + out) buffer under ~8 MiB so the
    # double-buffered pipeline fits comfortably in v7x's smaller scoped VMEM.
    bytes_per_row = msg_len * comp_itemsize + parity_pad * 4
    budget = 8 * 1024 * 1024
    b_tile = max(8, min(1024, (budget // bytes_per_row) // 8 * 8))
    if B <= b_tile:
        b_tile = ((B + 7) // 8) * 8
    b_pad = ((B + b_tile - 1) // b_tile) * b_tile

    x_comp = x.astype(compute_dtype)
    if b_pad != B:
        x_comp = jnp.pad(x_comp, ((0, b_pad - B), (0, 0)))

    grid = (b_pad // b_tile,)
    kernel = functools.partial(_parity_kernel, alphabet_size=alphabet_size)

    cost = pl.CostEstimate(
        flops=2 * b_pad * msg_len * parity_pad,
        transcendentals=0,
        bytes_accessed=(
            b_pad * msg_len * comp_itemsize          # x
            + msg_len * parity_pad * comp_itemsize   # matrix (resident)
            + b_pad * parity_pad * 4                 # parity out (int32)
        ),
    )

    parity_full = pl.pallas_call(
        kernel,
        out_shape=jax.ShapeDtypeStruct((b_pad, parity_pad), jnp.int32),
        grid_spec=pltpu.PrefetchScalarGridSpec(
            num_scalar_prefetch=0,
            grid=grid,
            in_specs=[
                pl.BlockSpec((b_tile, msg_len), lambda i: (i, 0)),
                # Constant index_map -> matrix stays resident in VMEM.
                pl.BlockSpec((msg_len, parity_pad), lambda i: (0, 0)),
            ],
            out_specs=pl.BlockSpec((b_tile, parity_pad), lambda i: (i, 0)),
        ),
        compiler_params=pltpu.CompilerParams(
            dimension_semantics=("parallel",),
        ),
        cost_estimate=cost,
    )(x_comp, m_comp)

    parity = parity_full[:B, :parity_len]
    # Systematic code: message columns are the (unmodified) input.
    return jnp.concatenate([x.astype(jnp.int32), parity], axis=1)


def make_systematic_matrix(key, message_length, code_length):
    """Deterministic stand-in for the torch buffer init: each row of
    (message_length, code_length - message_length) gets exactly 3 ones at the
    top-3 positions of a random sample."""
    parity_len = code_length - message_length
    sample = jax.random.uniform(key, (message_length, parity_len))
    _, idx = jax.lax.top_k(sample, 3)  # (msg_len, 3) distinct columns
    matrix = jax.nn.one_hot(idx, parity_len, dtype=jnp.float32).sum(axis=1)
    return matrix  # (msg_len, parity_len) float32, 3 ones per row


if __name__ == "__main__":
    # Small shapes consistent with the module's forward:
    #   x: (batch, message_length) of symbols in [0, alphabet_size)
    batch = 8
    message_length = 32
    code_length = 64
    alphabet_size = 2

    key = jax.random.PRNGKey(0)
    k_mat, k_x = jax.random.split(key)

    matrix = make_systematic_matrix(k_mat, message_length, code_length)
    x = jax.random.randint(
        k_x, (batch, message_length), 0, alphabet_size, dtype=jnp.int32
    )

    out = random_systematic_linear_encode(x, matrix, alphabet_size)
    out = jax.block_until_ready(out)

    # Reference check in plain JAX (same math as the torch forward).
    parity_ref = jnp.remainder(
        x.astype(jnp.float32) @ matrix, float(alphabet_size)
    )
    ref = jnp.concatenate([x, parity_ref.astype(jnp.int32)], axis=1)
    assert out.shape == (batch, code_length)
    assert out.dtype == jnp.int32
    assert jnp.array_equal(out, ref), "Pallas output mismatch vs reference"

    print("KERNEL_OK")
</pallas_src>

<mosaic_0001>
module attributes {stable_mosaic.version = 11 : i64} {
  func.func @_parity_kernel(%arg0: i32, %arg1: memref<8x32xbf16, #tpu.memory_space<vmem>>, %arg2: memref<32x128xbf16, #tpu.memory_space<vmem>>, %arg3: memref<8x128xi32, #tpu.memory_space<vmem>>) attributes {dimension_semantics = [#tpu.dimension_semantics<parallel>], iteration_bounds = array<i64: 1>, scalar_prefetch = 0 : i64, scratch_operands = 0 : i64, tpu.core_type = #tpu.core_type<tc>, window_params = [{transform_indices = @transform_0, window_bounds = array<i64: 8, 32>}, {pipeline_mode = #tpu.pipeline_mode<synchronous>, transform_indices = @transform_1, window_bounds = array<i64: 32, 128>}, {transform_indices = @transform_2, window_bounds = array<i64: 8, 128>}]} {
    %c0 = arith.constant 0 : index
    %c0_0 = arith.constant 0 : index
    %0 = vector.load %arg1[%c0, %c0_0] : memref<8x32xbf16, #tpu.memory_space<vmem>>, vector<8x32xbf16>
    %c0_1 = arith.constant 0 : index
    %c0_2 = arith.constant 0 : index
    %1 = vector.load %arg2[%c0_1, %c0_2] : memref<32x128xbf16, #tpu.memory_space<vmem>>, vector<32x128xbf16>
    %cst = arith.constant dense<0.000000e+00> : vector<8x128xf32>
    %2 = tpu.matmul %0, %1, %cst {dimension_numbers = #tpu.dot_dimension_numbers<[1], [0], [0], [1], [0, 0, 1, 1], [], []>} : vector<8x32xbf16>, vector<32x128xbf16>, vector<8x128xf32> -> vector<8x128xf32>
    %3 = arith.fptosi %2 : vector<8x128xf32> to vector<8x128xi32>
    %c1_i32 = arith.constant 1 : i32
    %4 = vector.broadcast %c1_i32 : i32 to vector<8x128xi32>
    %5 = arith.andi %3, %4 : vector<8x128xi32>
    %c0_3 = arith.constant 0 : index
    %c0_4 = arith.constant 0 : index
    %6 = vector.load %arg3[%c0_3, %c0_4] : memref<8x128xi32, #tpu.memory_space<vmem>>, vector<8x128xi32>
    tpu.vector_store %arg3[%c0_3, %c0_4], %5 {strides = array<i32>} : memref<8x128xi32, #tpu.memory_space<vmem>>, vector<8x128xi32>,
    return
  }
  func.func @transform_0(%arg0: i32) -> (i32, i32) {
    %c0_i32 = arith.constant 0 : i32
    %c0_i32_0 = arith.constant 0 : i32
    return %arg0, %c0_i32 : i32, i32
  }
  func.func @transform_1(%arg0: i32) -> (i32, i32) {
    %c0_i32 = arith.constant 0 : i32
    %c0_i32_0 = arith.constant 0 : i32
    %c0_i32_1 = arith.constant 0 : i32
    return %c0_i32, %c0_i32_0 : i32, i32
  }
  func.func @transform_2(%arg0: i32) -> (i32, i32) {
    %c0_i32 = arith.constant 0 : i32
    %c0_i32_0 = arith.constant 0 : i32
    return %arg0, %c0_i32 : i32, i32
  }
}

</mosaic_0001>

<bundles_post_ra>
// kernel: tpu_custom_call.1
= control target key start
LH: loop header
LB: loop body
LE: loop exit
PB: predicated region body
PF: predicated region fallthrough
CT: control target
= control target key end

     0   :  { %7 = vsyncpa [#allocation3], 0  ;;  %s281_s0 = inlined_call_operand.hbm [shape: bf16[8,32], index: 0, kind: input, shape index: {}]   ;;  %s282_s1 = inlined_call_operand.hbm [shape: bf16[32,128], index: 1, kind: input, shape index: {}]   ;;  %s283_s2 = inlined_call_operand.hbm [shape: s32[8,128], index: 2, kind: output, shape index: {}]  }
   0x1   :  { %8 = vsyncpa [#allocation6], 0 }
   0x2   :  { %9 = vsyncpa [#allocation4], 0  ;;  %s216_s9 = smov [#allocation2]   ;;  %s217_s11 = smov [#allocation5]  }
   0x3   :  { %s16_s10 = sshll.u32 %s216_s9, 4  ;;  %s25_s12 = sshll.u32 %s217_s11, 4  ;;  %s17_s10 = int_to_ptr.vmem [resolvable:$true] %s16_s10  ;;  %s238_s12 = int_to_ptr.vmem [resolvable:$true] %s25_s12 }
   0x4   :  { %s144_s15 = scalar_lea.hbm %s281_s0, 64 }
   0x5   :  { %p145_p0 = scmp.ne.s32.totalorder %s281_s0, %s144_s15  ;;  %p148_p1 = scmp.lt.u32.totalorder %s144_s15, %s281_s0 }
   0x7   :  { %p150_p2 = pnand %p148_p1, %p145_p0 }
   0x9   :  { %153 = shalt.err (!%p150_p2)
}
   0xa   :  { %s154_s20 = scalar_lea.vmem %s17_s10, 64  ;;  %p159_p4 = scmp.lt.s32.totalorder %s17_s10, %s17_s10 }
   0xb   :  { %p155_p3 = scmp.ne.s32.totalorder %s17_s10, %s154_s20  ;;  %p160_p5 = scmp.lt.s32.totalorder %s154_s20, %s154_s20 }
   0xd   :  { %p161_p6 = por %p160_p5, %p159_p4 }
   0xf   :  { %p162_p7 = pnand %p161_p6, %p155_p3 }
  0x11   :  { %165 = shalt.err (!%p162_p7)
}
  0x12   :  { %19 = dma.hbm_to_vmem [thread:$0]  %s281_s0, 64, %s17_s10, [#allocation3]  }
  0x13   :  { %s166_s25 = scalar_lea.hbm %s282_s1, 256 }
  0x14   :  { %p167_p8 = scmp.ne.s32.totalorder %s282_s1, %s166_s25  ;;  %p170_p9 = scmp.lt.u32.totalorder %s166_s25, %s282_s1 }
  0x16   :  { %p172_p10 = pnand %p170_p9, %p167_p8 }
  0x18   :  { %175 = shalt.err (!%p172_p10)
}
  0x19   :  { %s176_s30 = scalar_lea.vmem %s238_s12, 256  ;;  %p181_p12 = scmp.lt.s32.totalorder %s238_s12, %s238_s12 }
  0x1a   :  { %p177_p11 = scmp.ne.s32.totalorder %s238_s12, %s176_s30  ;;  %p182_p13 = scmp.lt.s32.totalorder %s176_s30, %s176_s30 }
  0x1c   :  { %p183_p0 = por %p182_p13, %p181_p12 }
  0x1e   :  { %p184_p1 = pnand %p183_p0, %p177_p11 }
  0x20   :  { %187 = shalt.err (!%p184_p1)
}
  0x21   :  { %s218_s0 = smov 64   ;;  %s219_s3 = smov 4  }
  0x22   :  { %31 = dma.hbm_to_vmem [thread:$0]  %s282_s1, 256, %s238_s12, [#allocation6], %s218_s0, %s218_s0, %s219_s3  }
  0x23   :  { %210 = dma.done.wait [#allocation3], 64  }
  0x24   :  { %211 = vsyncadd [#allocation3], 4294967232 }
  0x25   :  { %212 = dma.done.wait [#allocation6], 256  }
  0x26   :  { %213 = vsyncadd [#allocation6], 4294967040  ;;  %v220_v0 = vmov 0.0   ;;  %vm221_vm0 = vmmov 0   ;;  %v142_v1 = vld [vmem:[#allocation5] sm:$0xff]   ;;  %v143_v2 = vld [vmem:[#allocation5 + $0x8] sm:$0xff]  }
  0x27   :  { %125 = vmatprep.subr.bf16.mxu0 %v220_v0  ;;  %129 = vmatprep.mubr.msk.bf16.mxu0 %vm221_vm0, %v220_v0  ;;  %v39_v3 = vld [vmem:[#allocation2] sm:$0xf]  ;;  %vm56_vm1 = vcmask 261120   ;;  %s222_s1 = smov [#allocation7]  }
  0x28   :  { %126 = vmatpush3.bf16.msra.mxu0 %v142_v1  ;;  %s109_s6 = sshll.u32 %s222_s1, 4  ;;  %s110_s6 = int_to_ptr.vmem [resolvable:$true] %s109_s6 }
  0x29   :  { %127 = vmatprep.subr.bf16.mxu0 %v220_v0  ;;  %s188_s7 = scalar_lea.vmem %s110_s6, 128  ;;  %p193_p3 = scmp.lt.s32.totalorder %s110_s6, %s110_s6 }
  0x2a   :  { %p189_p2 = scmp.ne.s32.totalorder %s110_s6, %s188_s7  ;;  %p194_p4 = scmp.lt.s32.totalorder %s188_s7, %s188_s7 }
  0x2c   :  { %128 = vmatpush3.bf16.msra.mxu0 %v143_v2  ;;  %p195_p5 = por %p194_p4, %p193_p3 }
  0x2e   :  { %p196_p6 = pnand %p195_p5, %p189_p2 }
  0x2f   :  { %130 = vmatmul.mubr.msk.bf16.vlgmr.msra.gmra.mrb[0].mxu0 %vm56_vm1, %v39_v3 }
 0x102   :  { %v94_v4 = vpop.f32.mrb[0].mxu0 }
 0x103   :  { %v133_v5 = vtrunc.f32 %v94_v4  ;;  %v131_v6 = vpop.f32.mrb[1].mxu0 }
 0x104   :  { %v97_v7 = vpop.f32.mrb[2].mxu0 }
 0x105   :  { %v134_v8 = vcvt.f32.s32 %v133_v5  ;;  %v132_v9 = vpop.f32.mrb[3].mxu0 }
 0x107   :  { %v101_v10 = vand.u32 1, %v134_v8 }
 0x109   :  { %102 = vst [vmem:[#allocation7] sm:$0xff] %v101_v10 }
 0x10a   :  { %199 = shalt.err (!%p196_p6)
}
 0x10b   :  { %s200_s10 = scalar_lea.hbm %s283_s2, 128 }
 0x10c   :  { %p201_p7 = scmp.ne.s32.totalorder %s283_s2, %s200_s10  ;;  %p204_p8 = scmp.lt.u32.totalorder %s200_s10, %s283_s2 }
 0x10e   :  { %p206_p9 = pnand %p204_p8, %p201_p7 }
 0x110   :  { %209 = shalt.err (!%p206_p9)
}
 0x111   :  { %112 = dma.vmem_to_hbm [thread:$0]  %s110_s6, 128, %s283_s2, [#allocation4]  }
 0x112   :  { %214 = dma.done.wait [#allocation4], 128  }
 0x113   :  { %215 = vsyncadd [#allocation4], 4294967168 }
 0x114   :  { %116 = vsyncpa [#allocation3], 1 }
 0x115   :  { %117 = vsyncpa [#allocation6], 1 }
 0x116   :  { %118 = vsyncpa [#allocation4], 1 }

</bundles_post_ra>
